<compile_context>
chip_gen: v5e
topology: v5e:2x2
jax: 0.10.0
libtpu: 0.0.40
codegen_flags: <defaults>
</compile_context>

<pallas_src>
import math

import jax
import jax.numpy as jnp
from jax.experimental import pallas as pl
from jax.experimental.pallas import tpu as pltpu

MAX_LEN = 512


def _build_pe_table(d_model: int, max_len: int = MAX_LEN) -> jnp.ndarray:
    """Sinusoidal PE buffer (max_len, d_model), mirrors PositionalEncoding.__init__."""
    position = jnp.arange(max_len, dtype=jnp.float32)[:, None]               # (L, 1)
    div_term = jnp.exp(
        jnp.arange(0, d_model, 2, dtype=jnp.float32) * (-math.log(10000.0) / d_model)
    )                                                                         # (D/2,)
    pe = jnp.zeros((max_len, d_model), dtype=jnp.float32)
    pe = pe.at[:, 0::2].set(jnp.sin(position * div_term))
    pe = pe.at[:, 1::2].set(jnp.cos(position * div_term))
    return pe


def _pe_add_kernel(x_ref, pe_ref, o_ref):
    # x/o tiles: (bB, tT, Dl); pe tile: (tT, Dl). Broadcast over the leading
    # batch dim is free (same vregs reused); plain VPU elementwise add.
    o_ref[...] = x_ref[...] + pe_ref[...]


def positional_encoding(x: jnp.ndarray, pe_table: jnp.ndarray) -> jnp.ndarray:
    """x: (B, T, D); returns x + pe[:T] broadcast over batch (PyTorch forward)."""
    B, T, D = x.shape
    max_len, d_model = pe_table.shape
    assert D == d_model, f"d_model mismatch: {D} vs {d_model}"
    assert T <= max_len, f"sequence length {T} exceeds max_len {max_len}"

    # Pre-cast PE once in the wrapper: halves PE DMA traffic for bf16 activations
    # and keeps per-element converts out of the hot body.
    pe = pe_table[:T, :].astype(x.dtype)

    # ---- Lane-densify: fold groups of r sequence rows into the lane dim so the
    # last dim is a multiple of 128 (unmasked vst stores). Pure layout plumbing:
    # the x[b, t, d] <-> pe[t, d] correspondence is preserved exactly.
    r = 1
    if D % 128 != 0:
        r = 128 // math.gcd(128, D)    # smallest r with (r * D) % 128 == 0
        if T % r != 0:
            r = 1                      # fall back to masked stores
    Tl, Dl = T // r, D * r
    x_l = x.reshape(B, Tl, Dl)         # row-major reshape: metadata-only
    pe_l = pe.reshape(Tl, Dl)

    # ---- Tile sizing: target ~2 MiB per x block. Prefer keeping the whole
    # batch in one block (fewest grid steps); shrink tT first, split batch only
    # if even tT=8 with the full batch would blow the target.
    itemsize = jnp.dtype(x.dtype).itemsize
    row_bytes = max(Dl * itemsize, 1)          # bytes per folded seq row (1 batch elem)
    target_block_bytes = 2 << 20
    tT_full_batch = (target_block_bytes // (B * row_bytes)) // 8 * 8
    if tT_full_batch >= 8 or Tl * B * row_bytes <= target_block_bytes:
        bB = B
        tT = min(Tl, max(8, tT_full_batch))
    else:
        tT = min(Tl, 8)
        bB = min(B, max(1, target_block_bytes // (tT * row_bytes)))
    n_t = pl.cdiv(Tl, tT)                      # edge tiles masked by Pallas (elementwise-safe)
    n_b = pl.cdiv(B, bB)

    cost = pl.CostEstimate(
        flops=B * T * D,
        transcendentals=0,
        bytes_accessed=(2 * B * T * D + T * D) * itemsize,
    )

    out = pl.pallas_call(
        _pe_add_kernel,
        out_shape=jax.ShapeDtypeStruct((B, Tl, Dl), x.dtype),
        grid_spec=pltpu.PrefetchScalarGridSpec(
            num_scalar_prefetch=0,
            # T-tiles outer, batch-tiles inner (usually n_b == 1 -> effectively
            # a 1-D grid). The PE index_map ignores b, so the PE block stays
            # resident across the inner batch iterations (no re-DMA), and both
            # axes can be sharded across the two TensorCores on v7x.
            grid=(n_t, n_b),
            in_specs=[
                pl.BlockSpec((bB, tT, Dl), lambda t, b: (b, t, 0)),   # x
                pl.BlockSpec((tT, Dl), lambda t, b: (t, 0)),          # pe
            ],
            out_specs=pl.BlockSpec((bB, tT, Dl), lambda t, b: (b, t, 0)),
        ),
        compiler_params=pltpu.CompilerParams(
            dimension_semantics=("parallel", "parallel"),
        ),
        cost_estimate=cost,
    )(x_l, pe_l)

    return out.reshape(B, T, D)


if __name__ == "__main__":
    key = jax.random.PRNGKey(0)

    # Primary shape (lane-folding path: D=32 -> r=4 -> Dl=128).
    B, T, D = 2, 8, 32
    x = jax.random.normal(key, (B, T, D), dtype=jnp.float32)
    pe_table = _build_pe_table(D, MAX_LEN)
    out = jax.block_until_ready(positional_encoding(x, pe_table))
    ref = x + pe_table[None, :T, :]
    assert out.shape == (B, T, D)
    assert jnp.allclose(out, ref, atol=1e-6), "mismatch vs reference (folded path)"

    # Secondary shape exercising the masked-store fallback (T % r != 0).
    B2, T2, D2 = 2, 12, 48
    x2 = jax.random.normal(jax.random.PRNGKey(1), (B2, T2, D2), dtype=jnp.float32)
    pe_table2 = _build_pe_table(D2, MAX_LEN)
    out2 = jax.block_until_ready(positional_encoding(x2, pe_table2))
    ref2 = x2 + pe_table2[None, :T2, :]
    assert jnp.allclose(out2, ref2, atol=1e-6), "mismatch vs reference (fallback path)"

    print("KERNEL_OK")
</pallas_src>

<mosaic_0001>
module attributes {stable_mosaic.version = 11 : i64} {
  func.func @_pe_add_kernel(%arg0: i32, %arg1: i32, %arg2: memref<2x2x128xf32, #tpu.memory_space<vmem>>, %arg3: memref<2x128xf32, #tpu.memory_space<vmem>>, %arg4: memref<2x2x128xf32, #tpu.memory_space<vmem>>) attributes {dimension_semantics = [#tpu.dimension_semantics<parallel>, #tpu.dimension_semantics<parallel>], iteration_bounds = array<i64: 1, 1>, scalar_prefetch = 0 : i64, scratch_operands = 0 : i64, tpu.core_type = #tpu.core_type<tc>, window_params = [{transform_indices = @transform_0, window_bounds = array<i64: 2, 2, 128>}, {transform_indices = @transform_1, window_bounds = array<i64: 2, 128>}, {transform_indices = @transform_2, window_bounds = array<i64: 2, 2, 128>}]} {
    %c0 = arith.constant 0 : index
    %c0_0 = arith.constant 0 : index
    %c0_1 = arith.constant 0 : index
    %0 = vector.load %arg2[%c0, %c0_0, %c0_1] : memref<2x2x128xf32, #tpu.memory_space<vmem>>, vector<2x2x128xf32>
    %c0_2 = arith.constant 0 : index
    %c0_3 = arith.constant 0 : index
    %1 = vector.load %arg3[%c0_2, %c0_3] : memref<2x128xf32, #tpu.memory_space<vmem>>, vector<2x128xf32>
    %2 = vector.shape_cast %1 : vector<2x128xf32> to vector<1x2x128xf32>
    %3 = vector.broadcast %2 : vector<1x2x128xf32> to vector<2x2x128xf32>
    %4 = arith.addf %0, %3 : vector<2x2x128xf32>
    %c0_4 = arith.constant 0 : index
    %c0_5 = arith.constant 0 : index
    %c0_6 = arith.constant 0 : index
    %5 = vector.load %arg4[%c0_4, %c0_5, %c0_6] : memref<2x2x128xf32, #tpu.memory_space<vmem>>, vector<2x2x128xf32>
    tpu.vector_store %arg4[%c0_4, %c0_5, %c0_6], %4 {strides = array<i32>} : memref<2x2x128xf32, #tpu.memory_space<vmem>>, vector<2x2x128xf32>,
    return
  }
  func.func @transform_0(%arg0: i32, %arg1: i32) -> (i32, i32, i32) {
    %c0_i32 = arith.constant 0 : i32
    %c0_i32_0 = arith.constant 0 : i32
    return %arg1, %arg0, %c0_i32 : i32, i32, i32
  }
  func.func @transform_1(%arg0: i32, %arg1: i32) -> (i32, i32) {
    %c0_i32 = arith.constant 0 : i32
    %c0_i32_0 = arith.constant 0 : i32
    return %arg0, %c0_i32 : i32, i32
  }
  func.func @transform_2(%arg0: i32, %arg1: i32) -> (i32, i32, i32) {
    %c0_i32 = arith.constant 0 : i32
    %c0_i32_0 = arith.constant 0 : i32
    return %arg1, %arg0, %c0_i32 : i32, i32, i32
  }
}

</mosaic_0001>

<bundles_post_ra>
// kernel: tpu_custom_call.1
= control target key start
LH: loop header
LB: loop body
LE: loop exit
PB: predicated region body
PF: predicated region fallthrough
CT: control target
= control target key end

     0   :  { %7 = vsyncpa [#allocation3], 0  ;;  %s181_s0 = inlined_call_operand.hbm [shape: f32[2,2,128], index: 0, kind: input, shape index: {}]   ;;  %s182_s1 = inlined_call_operand.hbm [shape: f32[2,128], index: 1, kind: input, shape index: {}]   ;;  %s183_s2 = inlined_call_operand.hbm [shape: f32[2,2,128], index: 2, kind: output, shape index: {}]  }
   0x1   :  { %8 = vsyncpa [#allocation6], 0 }
   0x2   :  { %9 = vsyncpa [#allocation4], 0  ;;  %s14_s11 = sshll.u32 %s181_s0, 4  ;;  %s152_s12 = smov [#allocation2]   ;;  %s15_s11 = int_to_ptr.hbm [resolvable:$true] %s14_s11 }
   0x3   :  { %s16_s13 = sshll.u32 %s152_s12, 4  ;;  %s28_s16 = sshll.u32 %s182_s1, 4  ;;  %s17_s13 = int_to_ptr.vmem [resolvable:$true] %s16_s13  ;;  %s29_s16 = int_to_ptr.hbm [resolvable:$true] %s28_s16 }
   0x4   :  { %s153_s17 = smov 32   ;;  %s154_s18 = smov 2  }
   0x5   :  { %22 = dma.hbm_to_vmem [thread:$0]  %s15_s11, 64, %s17_s13, [#allocation3], %s153_s17, %s153_s17, %s154_s18  }
   0x6   :  { %s155_s19 = smov [#allocation5]  }
   0x7   :  { %s30_s20 = sshll.u32 %s155_s19, 4  ;;  %s31_s20 = int_to_ptr.vmem [resolvable:$true] %s30_s20 }
   0x8   :  { %33 = dma.hbm_to_vmem [thread:$0]  %s29_s16, 32, %s31_s20, [#allocation6]  }
   0x9   :  { %146 = dma.done.wait [#allocation3], 64  }
   0xa   :  { %147 = vsyncadd [#allocation3], 4294967232 }
   0xb   :  { %148 = dma.done.wait [#allocation6], 32  }
   0xc   :  { %149 = vsyncadd [#allocation6], 4294967264  ;;  %s156_s0 = smov [#allocation7]   ;;  %s55_s24 = sshll.u32 %s183_s2, 4  ;;  %v42_v0 = vld [vmem:[#allocation2] sm:$0x3]  ;;  %s56_s24 = int_to_ptr.hbm [resolvable:$true] %s55_s24 }
   0xd   :  { %s53_s21 = sshll.u32 %s156_s0, 4  ;;  %v44_v1 = vld [vmem:[#allocation5] sm:$0x3]  ;;  %v43_v2 = vld [vmem:[#allocation2 + $0x2] sm:$0x3]  ;;  %s54_s21 = int_to_ptr.vmem [resolvable:$true] %s53_s21 }
   0xe   :  { %v45_v3 = vadd.f32 %v44_v1, %v42_v0  ;;  %v46_v4 = vadd.f32 %v44_v1, %v43_v2 }
  0x10   :  { %47 = vst [vmem:[#allocation7] sm:$0x3] %v45_v3 }
  0x11   :  { %48 = vst [vmem:[#allocation7 + $0x2] sm:$0x3] %v46_v4 }
  0x12   :  { %61 = dma.vmem_to_hbm [thread:$0]  %s54_s21, 64, %s56_s24, [#allocation4], %s153_s17, %s153_s17, %s154_s18  }
  0x13   :  { %150 = dma.done.wait [#allocation4], 64  }
  0x14   :  { %151 = vsyncadd [#allocation4], 4294967232 }
  0x15   :  { %66 = vsyncpa [#allocation3], 1 }
  0x16   :  { %67 = vsyncpa [#allocation6], 1 }
  0x17   :  { %68 = vsyncpa [#allocation4], 1 }

</bundles_post_ra>
